<compile_context>
chip_gen: v5e
topology: v5e:2x2
jax: 0.10.0
libtpu: 0.0.40
codegen_flags: <defaults>
</compile_context>

<pallas_src>
import jax
import jax.numpy as jnp
from jax.experimental import pallas as pl
from jax.experimental.pallas import tpu as pltpu


def _round_up(x, m):
    return (x + m - 1) // m * m


def _make_focal_kernel(gamma):
    g = float(gamma)
    g_int = int(g) if (g == int(g) and 0.0 <= g <= 8.0) else None

    def kernel(alpha_ref, preds_ref, labels_ref, out_ref):
        """
        alpha_ref : (C,)          f32  per-class alpha (SMEM)
        preds_ref : (C, RS, 128)  f32/bf16 logits, rows on (sublane, lane); pad rows = 0
        labels_ref: (RS, 128)     i32  labels; pad rows = -1 -> zero loss
        out_ref   : (1, 8, 128)   f32  per-block per-(sublane, lane) partial sums
        """
        num_classes = preds_ref.shape[0]
        lab = labels_ref[...]                                     # (RS, 128) i32

        # Row-wise max over classes: pure VPU maxes over dense vregs.
        m = preds_ref[0].astype(jnp.float32)
        for c in range(1, num_classes):
            m = jnp.maximum(m, preds_ref[c].astype(jnp.float32))

        # Single pass over the class slices: softmax denominator plus gather of
        # the labeled logit and of alpha[y].  No one-hot, no full log-softmax.
        se = jnp.zeros_like(m)
        x_sel = jnp.zeros_like(m)
        a_sel = jnp.zeros_like(m)
        for c in range(num_classes):
            x_c = preds_ref[c].astype(jnp.float32)
            se = se + jnp.exp(x_c - m)                            # EUP, dense
            sel = lab == c
            x_sel = jnp.where(sel, x_c, x_sel)
            a_sel = jnp.where(sel, alpha_ref[c], a_sel)

        # log p_t and p_t.  Pad rows: zero logits keep se finite, a_sel = 0
        # makes the loss contribution exactly zero.
        log_pt = (x_sel - m) - jnp.log(se)
        pt = jnp.exp(log_pt)

        omp = 1.0 - pt
        if g_int is not None:           # integer gamma -> pure VPU multiplies
            focal = jnp.ones_like(omp)
            for _ in range(g_int):
                focal = focal * omp
        else:                           # general gamma -> EUP exp/log chain
            focal = jnp.power(omp, g)

        loss = (-a_sel) * focal * log_pt                          # (RS, 128)

        # Per-(sublane, lane) partial sums: vreg-wise adds only (no XLU),
        # preserves precision at large row tiles; final reduce in the wrapper.
        rs = loss.shape[0]
        out_ref[0] = jnp.sum(loss.reshape(rs // 8, 8, 128), axis=0)

    return kernel


def _choose_row_tile(n_rows, num_classes,
                     vmem_budget_bytes=12 << 20, hard_cap_rows=65536):
    """Rows per grid step: as large as a VMEM budget that is safe on every
    generation allows (v5e 16 MiB scoped default, v6e/v7x 32 MiB scoped,
    v7x 64 MiB physical per TC).  Always a multiple of 1024 (8 sublanes x
    128 lanes) so the (rows/128, 128) block obeys the (8, 128) constraint."""
    # Double-buffered logits + labels plus ~10 f32 in-kernel temporaries / row.
    per_row_bytes = 2 * (num_classes + 1) * 4 + 10 * 4
    cap = (vmem_budget_bytes // per_row_bytes) // 1024 * 1024
    cap = max(1024, min(hard_cap_rows, cap))
    return min(cap, _round_up(n_rows, 1024))


def focal_loss_pallas(preds, labels, alpha_vec, gamma=2.0, size_average=True,
                      row_tile=None):
    """Matches FocalLoss.forward: preds [B,N,C] or [B,C]; labels [B,N] or [B]."""
    num_classes = preds.shape[-1]
    preds2 = preds.reshape(-1, num_classes)            # like .view(-1, C)
    if preds2.dtype not in (jnp.float32, jnp.bfloat16):
        preds2 = preds2.astype(jnp.float32)            # bf16 stays bf16 (half the HBM bytes)
    labels1 = labels.reshape(-1).astype(jnp.int32)
    n_rows = preds2.shape[0]

    if row_tile is None:
        row_tile = _choose_row_tile(n_rows, num_classes)
    row_tile = _round_up(row_tile, 1024)
    n_pad = _round_up(n_rows, row_tile)
    num_blocks = n_pad // row_tile
    rows_sub = row_tile // 128

    # Lane-dense layout: class axis leading, rows on the (sublane, lane) axes.
    # transpose + pad + reshape fuse into one XLA copy; pad rows get zero
    # logits and label -1 -> exactly-zero, finite loss contribution.
    preds_t = jnp.pad(preds2.T, ((0, 0), (0, n_pad - n_rows)))
    preds_t = preds_t.reshape(num_classes, n_pad // 128, 128)
    labels_t = jnp.pad(labels1, (0, n_pad - n_rows), constant_values=-1)
    labels_t = labels_t.reshape(n_pad // 128, 128)
    alpha_s = jnp.asarray(alpha_vec, jnp.float32).reshape(num_classes)

    partials = pl.pallas_call(
        _make_focal_kernel(gamma),
        out_shape=jax.ShapeDtypeStruct((num_blocks, 8, 128), jnp.float32),
        grid_spec=pltpu.PrefetchScalarGridSpec(
            num_scalar_prefetch=0,
            grid=(num_blocks,),
            in_specs=[
                pl.BlockSpec(memory_space=pltpu.MemorySpace.SMEM),   # alpha (C,)
                pl.BlockSpec((num_classes, rows_sub, 128),
                             lambda i: (0, i, 0)),                   # logits
                pl.BlockSpec((rows_sub, 128), lambda i: (i, 0)),     # labels
            ],
            out_specs=pl.BlockSpec((1, 8, 128), lambda i: (i, 0, 0)),
        ),
        compiler_params=pltpu.CompilerParams(
            dimension_semantics=("parallel",),
            vmem_limit_bytes=32 * 1024 * 1024),
    )(alpha_s, preds_t, labels_t)

    total = jnp.sum(partials)
    if size_average:
        return total / jnp.float32(n_rows)
    return total


def focal_loss_ref(preds, labels, alpha_vec, gamma=2.0, size_average=True):
    """Pure-JAX reference mirroring the PyTorch forward exactly."""
    num_classes = preds.shape[-1]
    preds2 = preds.reshape(-1, num_classes).astype(jnp.float32)
    labels1 = labels.reshape(-1)
    logp = jax.nn.log_softmax(preds2, axis=1)
    log_pt = jnp.take_along_axis(logp, labels1[:, None], axis=1)[:, 0]
    pt = jnp.exp(log_pt)
    a = jnp.asarray(alpha_vec, jnp.float32)[labels1]
    loss = -a * jnp.power(1.0 - pt, gamma) * log_pt
    return loss.mean() if size_average else loss.sum()


def make_alpha(alpha=0.25, num_classes=3):
    """Deterministic alpha exactly as in FocalLoss.__init__ (scalar alpha)."""
    a = jnp.zeros((num_classes,), jnp.float32)
    a = a.at[0].add(alpha)
    a = a.at[1:].add(1.0 - alpha)
    return a


if __name__ == "__main__":
    key = jax.random.PRNGKey(0)
    k1, k2, k3, k4 = jax.random.split(key, 4)

    num_classes = 3
    gamma = 2.0
    alpha_vec = make_alpha(alpha=0.25, num_classes=num_classes)

    # Case 1: detection-style [B, N, C], mean reduction, single grid block.
    B, Nbox = 2, 8
    preds = jax.random.normal(k1, (B, Nbox, num_classes), dtype=jnp.float32)
    labels = jax.random.randint(k2, (B, Nbox), 0, num_classes, dtype=jnp.int32)
    out = jax.block_until_ready(
        focal_loss_pallas(preds, labels, alpha_vec, gamma=gamma,
                          size_average=True))
    ref = focal_loss_ref(preds, labels, alpha_vec, gamma=gamma,
                         size_average=True)
    assert jnp.allclose(out, ref, rtol=1e-5, atol=1e-6), (out, ref)

    # Case 1b: bf16 logits exercise the halved-HBM path (upcast in-kernel).
    preds_bf = preds.astype(jnp.bfloat16)
    out_bf = jax.block_until_ready(
        focal_loss_pallas(preds_bf, labels, alpha_vec, gamma=gamma,
                          size_average=True))
    ref_bf = focal_loss_ref(preds_bf, labels, alpha_vec, gamma=gamma,
                            size_average=True)
    assert jnp.allclose(out_bf, ref_bf, rtol=1e-4, atol=1e-5), (out_bf, ref_bf)

    # Case 2: multi-block grid (row_tile override), row padding, sum reduction.
    B2, Nbox2 = 3, 1000   # N = 3000 rows -> 3 grid blocks of 1024 rows
    preds_b = jax.random.normal(k3, (B2, Nbox2, num_classes), dtype=jnp.float32)
    labels_b = jax.random.randint(k4, (B2, Nbox2), 0, num_classes,
                                  dtype=jnp.int32)
    out2 = jax.block_until_ready(
        focal_loss_pallas(preds_b, labels_b, alpha_vec, gamma=gamma,
                          size_average=False, row_tile=1024))
    ref2 = focal_loss_ref(preds_b, labels_b, alpha_vec, gamma=gamma,
                          size_average=False)
    assert jnp.allclose(out2, ref2, rtol=1e-4, atol=1e-3), (out2, ref2)

    print("KERNEL_OK")
</pallas_src>

<mosaic_0001>
module attributes {stable_mosaic.version = 11 : i64} {
  func.func @kernel(%arg0: i32, %arg1: memref<3xf32, #tpu.memory_space<smem>>, %arg2: memref<3x8x128xf32, #tpu.memory_space<vmem>>, %arg3: memref<8x128xi32, #tpu.memory_space<vmem>>, %arg4: memref<1x8x128xf32, #tpu.memory_space<vmem>>) attributes {dimension_semantics = [#tpu.dimension_semantics<parallel>], iteration_bounds = array<i64: 1>, scalar_prefetch = 0 : i64, scratch_operands = 0 : i64, tpu.core_type = #tpu.core_type<tc>, window_params = [{transform_indices = @transform_0, window_bounds = array<i64: 3>}, {transform_indices = @transform_1, window_bounds = array<i64: 3, 8, 128>}, {transform_indices = @transform_2, window_bounds = array<i64: 8, 128>}, {transform_indices = @transform_3, window_bounds = array<i64: 1, 8, 128>}]} {
    %c0 = arith.constant 0 : index
    %c0_0 = arith.constant 0 : index
    %0 = vector.load %arg3[%c0, %c0_0] : memref<8x128xi32, #tpu.memory_space<vmem>>, vector<8x128xi32>
    %c0_1 = arith.constant 0 : index
    %c0_2 = arith.constant 0 : index
    %c0_3 = arith.constant 0 : index
    %1 = vector.load %arg2[%c0_1, %c0_2, %c0_3] : memref<3x8x128xf32, #tpu.memory_space<vmem>>, vector<1x8x128xf32>
    %2 = vector.shape_cast %1 : vector<1x8x128xf32> to vector<8x128xf32>
    %c1 = arith.constant 1 : index
    %c0_4 = arith.constant 0 : index
    %c0_5 = arith.constant 0 : index
    %3 = vector.load %arg2[%c1, %c0_4, %c0_5] : memref<3x8x128xf32, #tpu.memory_space<vmem>>, vector<1x8x128xf32>
    %4 = vector.shape_cast %3 : vector<1x8x128xf32> to vector<8x128xf32>
    %5 = arith.maximumf %2, %4 : vector<8x128xf32>
    %c2 = arith.constant 2 : index
    %c0_6 = arith.constant 0 : index
    %c0_7 = arith.constant 0 : index
    %6 = vector.load %arg2[%c2, %c0_6, %c0_7] : memref<3x8x128xf32, #tpu.memory_space<vmem>>, vector<1x8x128xf32>
    %7 = vector.shape_cast %6 : vector<1x8x128xf32> to vector<8x128xf32>
    %8 = arith.maximumf %5, %7 : vector<8x128xf32>
    %cst = arith.constant 0.000000e+00 : f32
    %9 = vector.broadcast %cst : f32 to vector<8x128xf32>
    %cst_8 = arith.constant 0.000000e+00 : f32
    %10 = vector.broadcast %cst_8 : f32 to vector<8x128xf32>
    %cst_9 = arith.constant 0.000000e+00 : f32
    %11 = vector.broadcast %cst_9 : f32 to vector<8x128xf32>
    %c0_10 = arith.constant 0 : index
    %c0_11 = arith.constant 0 : index
    %c0_12 = arith.constant 0 : index
    %12 = vector.load %arg2[%c0_10, %c0_11, %c0_12] : memref<3x8x128xf32, #tpu.memory_space<vmem>>, vector<1x8x128xf32>
    %13 = vector.shape_cast %12 : vector<1x8x128xf32> to vector<8x128xf32>
    %14 = arith.subf %13, %8 : vector<8x128xf32>
    %15 = math.exp %14 : vector<8x128xf32>
    %16 = arith.addf %9, %15 : vector<8x128xf32>
    %c0_i32 = arith.constant 0 : i32
    %17 = vector.broadcast %c0_i32 : i32 to vector<8x128xi32>
    %18 = arith.cmpi eq, %0, %17 : vector<8x128xi32>
    %19 = arith.select %18, %13, %10 : vector<8x128xi1>, vector<8x128xf32>
    %c0_13 = arith.constant 0 : index
    %20 = memref.load %arg1[%c0_13] : memref<3xf32, #tpu.memory_space<smem>>
    %21 = vector.broadcast %20 : f32 to vector<8x128xf32>
    %22 = arith.select %18, %21, %11 : vector<8x128xi1>, vector<8x128xf32>
    %c1_14 = arith.constant 1 : index
    %c0_15 = arith.constant 0 : index
    %c0_16 = arith.constant 0 : index
    %23 = vector.load %arg2[%c1_14, %c0_15, %c0_16] : memref<3x8x128xf32, #tpu.memory_space<vmem>>, vector<1x8x128xf32>
    %24 = vector.shape_cast %23 : vector<1x8x128xf32> to vector<8x128xf32>
    %25 = arith.subf %24, %8 : vector<8x128xf32>
    %26 = math.exp %25 : vector<8x128xf32>
    %27 = arith.addf %16, %26 : vector<8x128xf32>
    %c1_i32 = arith.constant 1 : i32
    %28 = vector.broadcast %c1_i32 : i32 to vector<8x128xi32>
    %29 = arith.cmpi eq, %0, %28 : vector<8x128xi32>
    %30 = arith.select %29, %24, %19 : vector<8x128xi1>, vector<8x128xf32>
    %c1_17 = arith.constant 1 : index
    %31 = memref.load %arg1[%c1_17] : memref<3xf32, #tpu.memory_space<smem>>
    %32 = vector.broadcast %31 : f32 to vector<8x128xf32>
    %33 = arith.select %29, %32, %22 : vector<8x128xi1>, vector<8x128xf32>
    %c2_18 = arith.constant 2 : index
    %c0_19 = arith.constant 0 : index
    %c0_20 = arith.constant 0 : index
    %34 = vector.load %arg2[%c2_18, %c0_19, %c0_20] : memref<3x8x128xf32, #tpu.memory_space<vmem>>, vector<1x8x128xf32>
    %35 = vector.shape_cast %34 : vector<1x8x128xf32> to vector<8x128xf32>
    %36 = arith.subf %35, %8 : vector<8x128xf32>
    %37 = math.exp %36 : vector<8x128xf32>
    %38 = arith.addf %27, %37 : vector<8x128xf32>
    %c2_i32 = arith.constant 2 : i32
    %39 = vector.broadcast %c2_i32 : i32 to vector<8x128xi32>
    %40 = arith.cmpi eq, %0, %39 : vector<8x128xi32>
    %41 = arith.select %40, %35, %30 : vector<8x128xi1>, vector<8x128xf32>
    %c2_21 = arith.constant 2 : index
    %42 = memref.load %arg1[%c2_21] : memref<3xf32, #tpu.memory_space<smem>>
    %43 = vector.broadcast %42 : f32 to vector<8x128xf32>
    %44 = arith.select %40, %43, %33 : vector<8x128xi1>, vector<8x128xf32>
    %45 = arith.subf %41, %8 : vector<8x128xf32>
    %46 = math.log %38 : vector<8x128xf32>
    %47 = arith.subf %45, %46 : vector<8x128xf32>
    %48 = math.exp %47 : vector<8x128xf32>
    %cst_22 = arith.constant 1.000000e+00 : f32
    %49 = vector.broadcast %cst_22 : f32 to vector<8x128xf32>
    %50 = arith.subf %49, %48 : vector<8x128xf32>
    %cst_23 = arith.constant 1.000000e+00 : f32
    %51 = vector.broadcast %cst_23 : f32 to vector<8x128xf32>
    %52 = arith.mulf %51, %50 : vector<8x128xf32>
    %53 = arith.mulf %52, %50 : vector<8x128xf32>
    %cst_24 = arith.constant 0.000000e+00 : f32
    %54 = vector.broadcast %cst_24 : f32 to vector<8x128xf32>
    %55 = arith.subf %54, %44 : vector<8x128xf32>
    %56 = arith.mulf %55, %53 : vector<8x128xf32>
    %57 = arith.mulf %56, %47 : vector<8x128xf32>
    %58 = vector.shape_cast %57 : vector<8x128xf32> to vector<1x8x128xf32>
    %cst_25 = arith.constant dense<0.000000e+00> : vector<8x128xf32>
    %59 = vector.multi_reduction <add>, %58, %cst_25 [0] : vector<1x8x128xf32> to vector<8x128xf32>
    %c0_26 = arith.constant 0 : index
    %c0_27 = arith.constant 0 : index
    %c0_28 = arith.constant 0 : index
    %60 = vector.load %arg4[%c0_26, %c0_27, %c0_28] : memref<1x8x128xf32, #tpu.memory_space<vmem>>, vector<1x8x128xf32>
    %61 = vector.shape_cast %60 : vector<1x8x128xf32> to vector<8x128xf32>
    %62 = vector.shape_cast %59 : vector<8x128xf32> to vector<1x8x128xf32>
    tpu.vector_store %arg4[%c0_26, %c0_27, %c0_28], %62 {strides = array<i32>} : memref<1x8x128xf32, #tpu.memory_space<vmem>>, vector<1x8x128xf32>,
    return
  }
  func.func @transform_0(%arg0: i32) -> i32 {
    %c0_i32 = arith.constant 0 : i32
    %c0_i32_0 = arith.constant 0 : i32
    return %c0_i32 : i32
  }
  func.func @transform_1(%arg0: i32) -> (i32, i32, i32) {
    %c0_i32 = arith.constant 0 : i32
    %c0_i32_0 = arith.constant 0 : i32
    %c0_i32_1 = arith.constant 0 : i32
    return %c0_i32, %arg0, %c0_i32_0 : i32, i32, i32
  }
  func.func @transform_2(%arg0: i32) -> (i32, i32) {
    %c0_i32 = arith.constant 0 : i32
    %c0_i32_0 = arith.constant 0 : i32
    return %arg0, %c0_i32 : i32, i32
  }
  func.func @transform_3(%arg0: i32) -> (i32, i32, i32) {
    %c0_i32 = arith.constant 0 : i32
    %c0_i32_0 = arith.constant 0 : i32
    %c0_i32_1 = arith.constant 0 : i32
    return %arg0, %c0_i32, %c0_i32_0 : i32, i32, i32
  }
}

</mosaic_0001>

<bundles_post_ra>
// kernel: tpu_custom_call.1
= control target key start
LH: loop header
LB: loop body
LE: loop exit
PB: predicated region body
PF: predicated region fallthrough
CT: control target
= control target key end

     0   :  { %8 = vsyncpa [#allocation5], 0  ;;  %s279_s0 = inlined_call_operand.hbm [shape: f32[3], index: 0, kind: input, shape index: {}]   ;;  %s280_s1 = inlined_call_operand.hbm [shape: f32[3,8,128], index: 1, kind: input, shape index: {}]   ;;  %s281_s2 = inlined_call_operand.hbm [shape: s32[8,128], index: 2, kind: input, shape index: {}]   ;;  %s282_s3 = inlined_call_operand.hbm [shape: f32[1,8,128], index: 3, kind: output, shape index: {}]  }
   0x1   :  { %9 = vsyncpa [#allocation3], 0 }
   0x2   :  { %10 = vsyncpa [#allocation8], 0 }
   0x3   :  { %11 = vsyncpa [#allocation4], 0  ;;  %s17_s14 = sshll.u32 %s279_s0, 4  ;;  %s25_s17 = sshll.u32 %s280_s1, 4  ;;  %s18_s14 = int_to_ptr.hbm [resolvable:$true] %s17_s14  ;;  %s26_s17 = int_to_ptr.hbm [resolvable:$true] %s25_s17 }
   0x4   :  { %s235_s18 = smov [#allocation2]   ;;  %s236_s19 = smov [#allocation6]  }
   0x5   :  { %20 = dma.hbm_to_smem %s18_s14, 16, %s235_s18, [#allocation5]  }
   0x6   :  { %s27_s20 = sshll.u32 %s236_s19, 4  ;;  %s237_s21 = smov 128   ;;  %s28_s20 = int_to_ptr.vmem [resolvable:$true] %s27_s20 }
   0x7   :  { %s238_s22 = smov 8   ;;  %s39_s25 = sshll.u32 %s281_s2, 4  ;;  %s40_s25 = int_to_ptr.hbm [resolvable:$true] %s39_s25 }
   0x8   :  { %33 = dma.hbm_to_vmem [thread:$0]  %s26_s17, 384, %s28_s20, [#allocation3], %s237_s21, %s237_s21, %s238_s22  }
   0x9   :  { %s239_s0 = smov [#allocation7]  }
   0xa   :  { %s41_s26 = sshll.u32 %s239_s0, 4  ;;  %s42_s26 = int_to_ptr.vmem [resolvable:$true] %s41_s26 }
   0xb   :  { %44 = dma.hbm_to_vmem [thread:$0]  %s40_s25, 128, %s42_s26, [#allocation8]  }
   0xc   :  { %227 = dma.done.wait [#allocation5], 16  }
   0xd   :  { %228 = vsyncadd [#allocation5], 4294967280 }
   0xe   :  { %229 = dma.done.wait [#allocation3], 384  }
   0xf   :  { %230 = vsyncadd [#allocation3], 4294966912 }
  0x10   :  { %231 = dma.done.wait [#allocation8], 128  }
  0x11   :  { %232 = vsyncadd [#allocation8], 4294967168 }
  0x12   :  { %57 = sfence }
  0x13   :  { %v59_v0 = vld [vmem:[#allocation6] sm:$0xff]  ;;  %v61_v1 = vld [vmem:[#allocation6 + $0x8] sm:$0xff]  ;;  %v64_v3 = vld [vmem:[#allocation6 + $0x10] sm:$0xff]  ;;  %s72_s1 = sld [smem:[#allocation2]]  ;;  %s240_s28 = smov [#allocation9]  }
  0x14   :  { %v62_v2 = vmax.f32 %v59_v0, %v61_v1  ;;  %v58_v11 = vld [vmem:[#allocation7] sm:$0xff]  ;;  %s125_s2 = sld [smem:[#allocation2 + $0x1]]  ;;  %s111_s29 = sshll.u32 %s240_s28, 4  ;;  %s112_s29 = int_to_ptr.vmem [resolvable:$true] %s111_s29 }
  0x15   :  { %vm70_vm0 = vcmp.eq.s32.totalorder %v58_v11, 0  ;;  %vm79_vm1 = vcmp.eq.s32.totalorder %v58_v11, 1  ;;  %vm88_vm2 = vcmp.eq.s32.totalorder %v58_v11, 2  ;;  %s126_s27 = sld [smem:[#allocation2 + $0x2]]  ;;  %s113_s5 = sshll.u32 %s282_s3, 4  ;;  %s114_s5 = int_to_ptr.hbm [resolvable:$true] %s113_s5 }
  0x16   :  { %v65_v4 = vmax.f32 %v62_v2, %v64_v3  ;;  %v71_v15 = vsel %vm70_vm0, %v59_v0, 0.0 }
  0x17   :  { %v80_v18 = vsel %vm79_vm1, %v61_v1, %v71_v15 }
  0x18   :  { %v66_v5 = vsub.f32 %v59_v0, %v65_v4  ;;  %v75_v6 = vsub.f32 %v61_v1, %v65_v4  ;;  %v84_v7 = vsub.f32 %v64_v3, %v65_v4  ;;  %v89_v19 = vsel %vm88_vm2, %v64_v3, %v80_v18 }
  0x19   :  { %v93_v20 = vsub.f32 %v89_v19, %v65_v4  ;;  %v73_v23 = vstv %s72_s1 }
  0x1a   :  { %v67_v8 = vmul.f32 1.442695, %v66_v5  ;;  %v76_v9 = vmul.f32 1.442695, %v75_v6  ;;  %v85_v10 = vmul.f32 1.442695, %v84_v7  ;;  %v82_v26 = vstv %s125_s2 }
  0x1b   :  { %v74_v25 = vsel %vm70_vm0, %v73_v23, 0.0  ;;  %v91_v29 = vstv %s126_s27 }
  0x1c   :  { %133 = vpow2.f32 %v67_v8  ;;  %v83_v28 = vsel %vm79_vm1, %v82_v26, %v74_v25 }
  0x1d   :  { %135 = vpow2.f32 %v76_v9  ;;  %v92_v30 = vsel %vm88_vm2, %v91_v29, %v83_v28 }
  0x1e   :  { %137 = vpow2.f32 %v85_v10  ;;  %v101_v33 = vsub.f32 0.0, %v92_v30 }
  0x22   :  { %v134_v12 = vpop.eup %133 }
  0x23   :  { %v136_v13 = vpop.eup %135 }
  0x24   :  { %v138_v14 = vpop.eup %137  ;;  %v78_v16 = vadd.f32 %v136_v13, %v134_v12 }
  0x26   :  { %v87_v17 = vadd.f32 %v138_v14, %v78_v16 }
  0x28   :  { %139 = vlog2.f32 %v87_v17 }
  0x2e   :  { %v140_v21 = vpop.eup %139 }
  0x2f   :  { %v95_v22 = vmul.f32 0.6931472, %v140_v21 }
  0x31   :  { %v96_v24 = vsub.f32 %v93_v20, %v95_v22 }
  0x33   :  { %v97_v27 = vmul.f32 1.442695, %v96_v24 }
  0x35   :  { %141 = vpow2.f32 %v97_v27 }
  0x3b   :  { %v142_v31 = vpop.eup %141 }
  0x3c   :  { %v99_v32 = vsub.f32 1.0, %v142_v31 }
  0x3e   :  { %v100_v34 = vmul.f32 %v99_v32, %v99_v32 }
  0x40   :  { %v102_v35 = vmul.f32 %v101_v33, %v100_v34 }
  0x42   :  { %v103_v36 = vmul.f32 %v102_v35, %v96_v24 }
  0x44   :  { %105 = vst [vmem:[#allocation9] sm:$0xff] %v103_v36 }
  0x45   :  { %116 = dma.vmem_to_hbm [thread:$0]  %s112_s29, 128, %s114_s5, [#allocation4]  }
  0x46   :  { %233 = dma.done.wait [#allocation4], 128  }
  0x47   :  { %234 = vsyncadd [#allocation4], 4294967168 }
  0x48   :  { %121 = vsyncpa [#allocation3], 1 }
  0x49   :  { %122 = vsyncpa [#allocation8], 1 }
  0x4a   :  { %123 = vsyncpa [#allocation4], 1 }
  0x4b   :  { %124 = vsyncpa [#allocation5], 1 }

</bundles_post_ra>
